<compile_context>
chip_gen: v6e
topology: v6e:2x2x1
jax: 0.10.0
libtpu: 0.0.40
codegen_flags: <defaults>
</compile_context>

<pallas_src>
import functools

import jax
import jax.numpy as jnp
from jax import lax
from jax.experimental import pallas as pl
from jax.experimental.pallas import tpu as pltpu

EPS = 1e-5  # nn.BatchNorm2d default


def _round_up(x, m):
    return (x + m - 1) // m * m


def _erf(z):
    # Abramowitz & Stegun 7.1.26 rational approximation, |error| < 1.5e-7, so the exact
    # (erf-based) nn.GELU() path lowers cleanly in Mosaic: exp goes to the EUP, the rest
    # is VALU adds/muls.  Numerically matches true erf far inside the test tolerance.
    p = 0.3275911
    a1, a2, a3, a4, a5 = 0.254829592, -0.284496736, 1.421413741, -1.453152027, 1.061405429
    sgn = jnp.where(z < 0.0, -1.0, 1.0)
    az = jnp.abs(z)
    t = 1.0 / (1.0 + p * az)
    poly = t * (a1 + t * (a2 + t * (a3 + t * (a4 + t * a5))))
    return sgn * (1.0 - poly * jnp.exp(-az * az))


def _gelu_exact(y):
    # nn.GELU() default: 0.5 * x * (1 + erf(x / sqrt(2)))
    return 0.5 * y * (1.0 + _erf(y * 0.7071067811865476))


def _make_conv_tile(tm, padc, wp, k):
    """Builds fn(x_ref, w_ref) -> (Cout, tm) f32 conv tile.

    x_ref: (Cin, L_in_pad) bf16  — padded image flattened over (Hp, Wp), per image.
    w_ref: (Cout, k*k*Cin) bf16  — taps flattened (ki, kj, cin) along the K axis.
    Output lane q corresponds to padded-flat input index base+q; tap (ki,kj) reads
    base + q + ki*Wp + kj.
    """
    window = tm + padc
    taps = [(ki, kj) for ki in range(k) for kj in range(k)]

    def conv_tile(x_ref, w_ref):
        base = pl.multiple_of(pl.program_id(1) * tm, 128)        # lane-aligned dynamic start
        # ONE aligned window load; upcast to f32 so the XLU lane rotation stays on the
        # well-supported 32-bit path (values came from bf16, so the casts are exact).
        xw = x_ref[:, pl.ds(base, window)].astype(jnp.float32)   # (Cin, window)
        pieces = []
        for ki, kj in taps:
            d = ki * wp + kj                                      # static tap offset, d < padc
            if d == 0:
                shifted = xw
            else:
                # XLU roll instead of 9 unaligned lane slices; wrapped-around lanes land
                # at positions >= window - d >= tm, i.e. outside the [:tm] slice we keep.
                shifted = pltpu.roll(xw, window - d, axis=1)
            pieces.append(shifted[:, :tm])                        # lane-aligned slice
        # Stack the taps along sublanes -> ONE (k*k*Cin, tm) bf16 MXU operand.
        xstack = jnp.concatenate(pieces, axis=0).astype(jnp.bfloat16)
        # Single fused matmul over K = k*k*Cin (replaces 9 tiny K=Cin dots + 9 MRF drains
        # + 9 f32 accumulate passes over the (Cout, tm) tile).
        return jnp.dot(w_ref[...], xstack, preferred_element_type=jnp.float32)

    return conv_tile


def _make_stats_kernel(tm, padc, wp, k, l_out, w_out):
    conv_tile = _make_conv_tile(tm, padc, wp, k)

    def kernel(x_ref, w_ref, part_ref, acc_ref):
        j = pl.program_id(1)

        @pl.when(j == 0)
        def _():
            acc_ref[...] = jnp.zeros_like(acc_ref)

        conv = conv_tile(x_ref, w_ref)                            # (Cout, tm) f32
        # Validity mask rebuilt in-kernel (no mask DMA): lane q is a real output pixel
        # iff q < l_out and (q mod Wp) < W_out (excludes padded-width junk columns).
        q = j * tm + lax.broadcasted_iota(jnp.int32, (1, tm), 1)
        msk = ((q < l_out) & (q % wp < w_out)).astype(jnp.float32)
        am = conv * msk
        acc_ref[:, 0:1] += jnp.sum(am, axis=1, keepdims=True)          # per-channel sum
        acc_ref[:, 1:2] += jnp.sum(am * conv, axis=1, keepdims=True)   # per-channel sum sq

        @pl.when(j == pl.num_programs(1) - 1)
        def _():
            part_ref[...] = acc_ref[...]                          # single flush per image

    return kernel


def _make_norm_kernel(tm, padc, wp, k):
    conv_tile = _make_conv_tile(tm, padc, wp, k)

    def kernel(x_ref, w_ref, scale_ref, shift_ref, o_ref):
        conv = conv_tile(x_ref, w_ref)                            # (Cout, tm) f32
        y = conv * scale_ref[...] + shift_ref[...]                # BN folded into scale/shift
        o_ref[...] = _gelu_exact(y).astype(o_ref.dtype)           # exact (erf-based) GELU

    return kernel


@functools.partial(jax.jit, static_argnames=("kernel_size", "padding"))
def basic_conv(x, weight, gamma, beta, *, kernel_size=3, padding=1):
    """x: (N, Cin, H, W) NCHW f32; weight: (Cout, Cin, k, k); gamma/beta: (Cout,).

    Stride-1 convolution (as in the reproduced BasicConv config)."""
    n, cin, h, w = x.shape
    cout = weight.shape[0]
    k = kernel_size
    hp, wp = h + 2 * padding, w + 2 * padding
    h_out, w_out = hp - k + 1, wp - k + 1

    # Output pixels kept in "padded-width" flat coordinates q = y*Wp + x so every conv
    # tap is a constant flat offset; the (k-1) junk columns per row are excluded from
    # the BN stats in-kernel and cropped once in the wrapper.
    l_out = h_out * wp
    # Lane tile: biggest that keeps the f32 accumulator + dot result well inside the
    # 64-vreg file at this Cout (<= ~2048); raise only with a VMEM-scratch accumulator.
    tm = min(2048, _round_up(l_out, 128))
    l_out_pad = _round_up(l_out, tm)
    nm = l_out_pad // tm
    padc = _round_up(max((k - 1) * (wp + 1), 1), 128)    # window slack >= max tap offset
    l_in_pad = l_out_pad + padc

    # ---- layout plumbing (no HBM im2col, no N*H*W-sized transposes) ----
    xp = jnp.pad(x, ((0, 0), (0, 0), (padding, padding), (padding, padding)))
    x_flat = xp.reshape(n, cin, hp * wp)
    x_flat = jnp.pad(x_flat, ((0, 0), (0, 0), (0, l_in_pad - hp * wp)))
    x_flat = x_flat.astype(jnp.bfloat16)                          # halve HBM reads

    # Taps pre-flattened so the kernel does ONE (Cout, k*k*Cin) x (k*k*Cin, TM) MXU dot.
    w_flat = weight.transpose(0, 2, 3, 1).reshape(cout, k * k * cin).astype(jnp.bfloat16)

    cparams = pltpu.CompilerParams(
        # Batch axis is the megacore (v7x dual-TC) split so both cores never DMA the
        # same full-image x block; the M-tile axis carries the stats accumulation.
        dimension_semantics=("parallel", "arbitrary"),
        # Fits all generations at this size; raise towards 64-96 MiB on v6e (128 MiB
        # VMEM) for much larger H*W/Cin.  On v7x (64 MiB physical), switch the x spec to
        # a windowed halo block once the resident image approaches ~20-24 MiB.
        vmem_limit_bytes=32 * 1024 * 1024,
    )
    flops = 2 * k * k * cin * cout * tm * n * nm

    # ---- pass 1: conv + masked per-channel sum / sum-sq accumulated in VMEM scratch ----
    parts = pl.pallas_call(
        _make_stats_kernel(tm, padc, wp, k, l_out, w_out),
        out_shape=jax.ShapeDtypeStruct((n, cout, 2), jnp.float32),
        grid=(n, nm),
        in_specs=[
            pl.BlockSpec((None, cin, l_in_pad), lambda i, j: (i, 0, 0)),
            pl.BlockSpec((cout, k * k * cin), lambda i, j: (0, 0)),
        ],
        out_specs=pl.BlockSpec((None, cout, 2), lambda i, j: (i, 0, 0)),
        scratch_shapes=[pltpu.VMEM((cout, 2), jnp.float32)],
        compiler_params=cparams,
        cost_estimate=pl.CostEstimate(
            flops=flops, transcendentals=0,
            bytes_accessed=x_flat.size * 2 + n * cout * 2 * 4),
    )(x_flat, w_flat)

    # Combine per-image partials -> training-mode batch stats; fold gamma/beta.
    # TODO(synk): running_mean/running_var buffer updates (training bookkeeping) are not
    # produced; only the forward activation (which uses batch stats) is computed.
    gamma_f = gamma.astype(jnp.float32)
    beta_f = beta.astype(jnp.float32)
    count = jnp.float32(n * h_out * w_out)
    sums = jnp.sum(parts, axis=0)                                 # (Cout, 2)
    mean = sums[:, 0] / count
    # E[x^2]-E[x]^2 in f32 is fine at this size; switch to centered/Welford partials if
    # N*H*W grows enough for cancellation to matter.
    var = jnp.maximum(sums[:, 1] / count - mean * mean, 0.0)      # biased batch variance
    inv = lax.rsqrt(var + EPS)
    scale = (gamma_f * inv).reshape(cout, 1)
    shift = (beta_f - mean * gamma_f * inv).reshape(cout, 1)

    # ---- pass 2: conv (recomputed) + fused scale/shift + exact GELU, (Cout, TM) tiles ----
    out_flat = pl.pallas_call(
        _make_norm_kernel(tm, padc, wp, k),
        out_shape=jax.ShapeDtypeStruct((n, cout, l_out_pad), jnp.float32),
        grid=(n, nm),
        in_specs=[
            pl.BlockSpec((None, cin, l_in_pad), lambda i, j: (i, 0, 0)),
            pl.BlockSpec((cout, k * k * cin), lambda i, j: (0, 0)),
            pl.BlockSpec((cout, 1), lambda i, j: (0, 0)),
            pl.BlockSpec((cout, 1), lambda i, j: (0, 0)),
        ],
        out_specs=pl.BlockSpec((None, cout, tm), lambda i, j: (i, 0, j)),
        compiler_params=cparams,
        cost_estimate=pl.CostEstimate(
            flops=flops, transcendentals=n * nm * cout * tm,
            bytes_accessed=x_flat.size * 2 + n * cout * l_out_pad * 4),
    )(x_flat, w_flat, scale, shift)

    # Crop padded-width junk columns / tile tail; already channel-major => NCHW.
    # (Downstream consumers accepting the padded (Cout, L) layout can skip this pass;
    # emitting bf16 from the kernel would additionally halve the writeback.)
    out = out_flat[:, :, :l_out].reshape(n, cout, h_out, wp)[..., :w_out]
    return out


def _reference(x, weight, gamma, beta, padding=1):
    # Pure-JAX reference of Conv2d(bias=False) + train-mode BN + exact GELU, using the
    # same bf16-rounded operands the kernel feeds the MXU (accumulation in f32).
    xb = x.astype(jnp.bfloat16).astype(jnp.float32)
    wb = weight.astype(jnp.bfloat16).astype(jnp.float32)
    y = lax.conv_general_dilated(
        xb, wb, window_strides=(1, 1), padding=[(padding, padding)] * 2,
        dimension_numbers=("NCHW", "OIHW", "NCHW"))
    mean = jnp.mean(y, axis=(0, 2, 3), keepdims=True)
    var = jnp.mean((y - mean) ** 2, axis=(0, 2, 3), keepdims=True)
    y = (y - mean) * lax.rsqrt(var + EPS)
    y = y * gamma.reshape(1, -1, 1, 1) + beta.reshape(1, -1, 1, 1)
    return jax.nn.gelu(y, approximate=False)


if __name__ == "__main__":
    N, C_IN, H, W = 2, 4, 16, 16
    C_OUT, K = 8, 3

    key = jax.random.PRNGKey(0)
    kx, kw_, kg, kb = jax.random.split(key, 4)
    x = jax.random.normal(kx, (N, C_IN, H, W), dtype=jnp.float32)
    weight = jax.random.normal(kw_, (C_OUT, C_IN, K, K), dtype=jnp.float32) * 0.1
    gamma = 1.0 + 0.1 * jax.random.normal(kg, (C_OUT,), dtype=jnp.float32)
    beta = 0.1 * jax.random.normal(kb, (C_OUT,), dtype=jnp.float32)

    out = basic_conv(x, weight, gamma, beta, kernel_size=K, padding=1)
    out = jax.block_until_ready(out)

    ref = _reference(x, weight, gamma, beta, padding=1)
    assert out.shape == (N, C_OUT, H, W)
    max_err = jnp.max(jnp.abs(out - ref))
    assert jnp.allclose(out, ref, atol=2e-4, rtol=2e-4), f"mismatch vs reference: {max_err}"

    print("KERNEL_OK")
</pallas_src>

<mosaic_0001>
module attributes {stable_mosaic.version = 11 : i64} {
  func.func @kernel(%arg0: i32, %arg1: i32, %arg2: memref<1x4x512xbf16, #tpu.memory_space<vmem>>, %arg3: memref<8x36xbf16, #tpu.memory_space<vmem>>, %arg4: memref<1x8x2xf32, #tpu.memory_space<vmem>>, %arg5: memref<8x2xf32, #tpu.memory_space<vmem>>) attributes {dimension_semantics = [#tpu.dimension_semantics<parallel>, #tpu.dimension_semantics<arbitrary>], iteration_bounds = array<i64: 2, 1>, scalar_prefetch = 0 : i64, scratch_operands = 1 : i64, tpu.core_type = #tpu.core_type<tc>, window_params = [{transform_indices = @transform_0, window_bounds = array<i64: 1, 4, 512>}, {pipeline_mode = #tpu.pipeline_mode<synchronous>, transform_indices = @transform_1, window_bounds = array<i64: 8, 36>}, {transform_indices = @transform_2, window_bounds = array<i64: 1, 8, 2>}]} {
    %c0_i32 = arith.constant 0 : i32
    %0 = arith.cmpi eq, %arg1, %c0_i32 : i32
    %1 = arith.extui %0 : i1 to i32
    %c0_i32_0 = arith.constant 0 : i32
    %2 = arith.cmpi ne, %1, %c0_i32_0 : i32
    scf.if %2 {
      %cst_20 = arith.constant 0.000000e+00 : f32
      %73 = vector.broadcast %cst_20 : f32 to vector<8x2xf32>
      %c0_21 = arith.constant 0 : index
      %c0_22 = arith.constant 0 : index
      %74 = vector.load %arg5[%c0_21, %c0_22] : memref<8x2xf32, #tpu.memory_space<vmem>>, vector<8x2xf32>
      tpu.vector_store %arg5[%c0_21, %c0_22], %73 {strides = array<i32>} : memref<8x2xf32, #tpu.memory_space<vmem>>, vector<8x2xf32>,
    } else {
    }
    %c384_i32 = arith.constant 384 : i32
    %3 = arith.muli %arg1, %c384_i32 : i32
    %4 = tpu.assume_multiple %3, 128 : i32
    %c0 = arith.constant 0 : index
    %c0_1 = arith.constant 0 : index
    %5 = arith.index_cast %4 : i32 to index
    %6 = vector.load %arg2[%c0, %c0_1, %5] : memref<1x4x512xbf16, #tpu.memory_space<vmem>>, vector<1x4x512xbf16>
    %7 = vector.shape_cast %6 : vector<1x4x512xbf16> to vector<4x512xbf16>
    %8 = arith.extf %7 : vector<4x512xbf16> to vector<4x512xf32>
    %9 = vector.extract_strided_slice %8 {offsets = [0, 0], sizes = [4, 384], strides = [1, 1]} : vector<4x512xf32> to vector<4x384xf32>
    %c511_i32 = arith.constant 511 : i32
    %10 = tpu.dynamic_rotate %8 by %c511_i32 dim 1 : vector<4x512xf32>, i32 -> vector<4x512xf32>
    %11 = vector.extract_strided_slice %10 {offsets = [0, 0], sizes = [4, 384], strides = [1, 1]} : vector<4x512xf32> to vector<4x384xf32>
    %c510_i32 = arith.constant 510 : i32
    %12 = tpu.dynamic_rotate %8 by %c510_i32 dim 1 : vector<4x512xf32>, i32 -> vector<4x512xf32>
    %13 = vector.extract_strided_slice %12 {offsets = [0, 0], sizes = [4, 384], strides = [1, 1]} : vector<4x512xf32> to vector<4x384xf32>
    %c494_i32 = arith.constant 494 : i32
    %14 = tpu.dynamic_rotate %8 by %c494_i32 dim 1 : vector<4x512xf32>, i32 -> vector<4x512xf32>
    %15 = vector.extract_strided_slice %14 {offsets = [0, 0], sizes = [4, 384], strides = [1, 1]} : vector<4x512xf32> to vector<4x384xf32>
    %c493_i32 = arith.constant 493 : i32
    %16 = tpu.dynamic_rotate %8 by %c493_i32 dim 1 : vector<4x512xf32>, i32 -> vector<4x512xf32>
    %17 = vector.extract_strided_slice %16 {offsets = [0, 0], sizes = [4, 384], strides = [1, 1]} : vector<4x512xf32> to vector<4x384xf32>
    %c492_i32 = arith.constant 492 : i32
    %18 = tpu.dynamic_rotate %8 by %c492_i32 dim 1 : vector<4x512xf32>, i32 -> vector<4x512xf32>
    %19 = vector.extract_strided_slice %18 {offsets = [0, 0], sizes = [4, 384], strides = [1, 1]} : vector<4x512xf32> to vector<4x384xf32>
    %c476_i32 = arith.constant 476 : i32
    %20 = tpu.dynamic_rotate %8 by %c476_i32 dim 1 : vector<4x512xf32>, i32 -> vector<4x512xf32>
    %21 = vector.extract_strided_slice %20 {offsets = [0, 0], sizes = [4, 384], strides = [1, 1]} : vector<4x512xf32> to vector<4x384xf32>
    %c475_i32 = arith.constant 475 : i32
    %22 = tpu.dynamic_rotate %8 by %c475_i32 dim 1 : vector<4x512xf32>, i32 -> vector<4x512xf32>
    %23 = vector.extract_strided_slice %22 {offsets = [0, 0], sizes = [4, 384], strides = [1, 1]} : vector<4x512xf32> to vector<4x384xf32>
    %c474_i32 = arith.constant 474 : i32
    %24 = tpu.dynamic_rotate %8 by %c474_i32 dim 1 : vector<4x512xf32>, i32 -> vector<4x512xf32>
    %25 = vector.extract_strided_slice %24 {offsets = [0, 0], sizes = [4, 384], strides = [1, 1]} : vector<4x512xf32> to vector<4x384xf32>
    %26 = tpu.concatenate %9, %11, %13, %15, %17, %19, %21, %23, %25 in 0 : vector<4x384xf32>, vector<4x384xf32>, vector<4x384xf32>, vector<4x384xf32>, vector<4x384xf32>, vector<4x384xf32>, vector<4x384xf32>, vector<4x384xf32>, vector<4x384xf32> -> vector<36x384xf32>
    %27 = arith.truncf %26 : vector<36x384xf32> to vector<36x384xbf16>
    %c0_2 = arith.constant 0 : index
    %c0_3 = arith.constant 0 : index
    %28 = vector.load %arg3[%c0_2, %c0_3] : memref<8x36xbf16, #tpu.memory_space<vmem>>, vector<8x36xbf16>
    %cst = arith.constant dense<0.000000e+00> : vector<8x384xf32>
    %29 = tpu.matmul %28, %27, %cst {dimension_numbers = #tpu.dot_dimension_numbers<[1], [0], [0], [1], [0, 0, 1, 1], [], []>} : vector<8x36xbf16>, vector<36x384xbf16>, vector<8x384xf32> -> vector<8x384xf32>
    %c384_i32_4 = arith.constant 384 : i32
    %30 = arith.muli %arg1, %c384_i32_4 : i32
    %31 = tpu.iota {dimensions = array<i32: 1>} : vector<1x384xi32>
    %32 = vector.broadcast %30 : i32 to vector<1x384xi32>
    %33 = arith.addi %32, %31 : vector<1x384xi32>
    %c288_i32 = arith.constant 288 : i32
    %34 = vector.broadcast %c288_i32 : i32 to vector<1x384xi32>
    %35 = arith.cmpi slt, %33, %34 : vector<1x384xi32>
    %c18_i32 = arith.constant 18 : i32
    %c0_i32_5 = arith.constant 0 : i32
    %36 = arith.cmpi eq, %c18_i32, %c0_i32_5 : i32
    %c1_i32 = arith.constant 1 : i32
    %37 = arith.select %36, %c1_i32, %c18_i32 : i32
    %38 = vector.broadcast %37 : i32 to vector<1x384xi32>
    %39 = arith.remsi %33, %38 : vector<1x384xi32>
    %c0_i32_6 = arith.constant 0 : i32
    %40 = vector.broadcast %c0_i32_6 : i32 to vector<1x384xi32>
    %41 = arith.cmpi ne, %39, %40 : vector<1x384xi32>
    %c0_i32_7 = arith.constant 0 : i32
    %42 = vector.broadcast %c0_i32_7 : i32 to vector<1x384xi32>
    %43 = arith.cmpi slt, %39, %42 : vector<1x384xi32>
    %c0_i32_8 = arith.constant 0 : i32
    %44 = arith.cmpi slt, %37, %c0_i32_8 : i32
    %45 = vector.broadcast %44 : i1 to vector<1x384xi1>
    %46 = vector.broadcast %45 : vector<1x384xi1> to vector<1x384xi1>
    %47 = arith.xori %43, %46 : vector<1x384xi1>
    %48 = arith.andi %47, %41 : vector<1x384xi1>
    %49 = vector.broadcast %37 : i32 to vector<1x384xi32>
    %50 = arith.addi %39, %49 : vector<1x384xi32>
    %51 = arith.select %48, %50, %39 : vector<1x384xi1>, vector<1x384xi32>
    %c16_i32 = arith.constant 16 : i32
    %52 = vector.broadcast %c16_i32 : i32 to vector<1x384xi32>
    %53 = arith.cmpi slt, %51, %52 : vector<1x384xi32>
    %54 = arith.andi %35, %53 : vector<1x384xi1>
    %55 = arith.extui %54 : vector<1x384xi1> to vector<1x384xi32>
    %56 = arith.sitofp %55 : vector<1x384xi32> to vector<1x384xf32>
    %57 = vector.broadcast %56 : vector<1x384xf32> to vector<8x384xf32>
    %58 = arith.mulf %29, %57 : vector<8x384xf32>
    %c0_9 = arith.constant 0 : index
    %c0_10 = arith.constant 0 : index
    %59 = vector.load %arg5[%c0_9, %c0_10] : memref<8x2xf32, #tpu.memory_space<vmem>>, vector<8x1xf32>
    %cst_11 = arith.constant dense<0.000000e+00> : vector<8xf32>
    %60 = vector.multi_reduction <add>, %58, %cst_11 [1] : vector<8x384xf32> to vector<8xf32>
    %61 = vector.shape_cast %60 : vector<8xf32> to vector<8x1xf32>
    %62 = arith.addf %59, %61 : vector<8x1xf32>
    %c0_12 = arith.constant 0 : index
    %c0_13 = arith.constant 0 : index
    %63 = vector.load %arg5[%c0_12, %c0_13] : memref<8x2xf32, #tpu.memory_space<vmem>>, vector<8x1xf32>
    tpu.vector_store %arg5[%c0_12, %c0_13], %62 {strides = array<i32>} : memref<8x2xf32, #tpu.memory_space<vmem>>, vector<8x1xf32>,
    %c0_14 = arith.constant 0 : index
    %c1 = arith.constant 1 : index
    %64 = vector.load %arg5[%c0_14, %c1] : memref<8x2xf32, #tpu.memory_space<vmem>>, vector<8x1xf32>
    %65 = arith.mulf %58, %29 : vector<8x384xf32>
    %cst_15 = arith.constant dense<0.000000e+00> : vector<8xf32>
    %66 = vector.multi_reduction <add>, %65, %cst_15 [1] : vector<8x384xf32> to vector<8xf32>
    %67 = vector.shape_cast %66 : vector<8xf32> to vector<8x1xf32>
    %68 = arith.addf %64, %67 : vector<8x1xf32>
    %c0_16 = arith.constant 0 : index
    %c1_17 = arith.constant 1 : index
    %69 = vector.load %arg5[%c0_16, %c1_17] : memref<8x2xf32, #tpu.memory_space<vmem>>, vector<8x1xf32>
    tpu.vector_store %arg5[%c0_16, %c1_17], %68 {strides = array<i32>} : memref<8x2xf32, #tpu.memory_space<vmem>>, vector<8x1xf32>,
    %c0_i32_18 = arith.constant 0 : i32
    %70 = arith.cmpi eq, %arg1, %c0_i32_18 : i32
    %71 = arith.extui %70 : i1 to i32
    %c0_i32_19 = arith.constant 0 : i32
    %72 = arith.cmpi ne, %71, %c0_i32_19 : i32
    scf.if %72 {
      %c0_20 = arith.constant 0 : index
      %c0_21 = arith.constant 0 : index
      %73 = vector.load %arg5[%c0_20, %c0_21] : memref<8x2xf32, #tpu.memory_space<vmem>>, vector<8x2xf32>
      %c0_22 = arith.constant 0 : index
      %c0_23 = arith.constant 0 : index
      %c0_24 = arith.constant 0 : index
      %74 = vector.load %arg4[%c0_22, %c0_23, %c0_24] : memref<1x8x2xf32, #tpu.memory_space<vmem>>, vector<1x8x2xf32>
      %75 = vector.shape_cast %74 : vector<1x8x2xf32> to vector<8x2xf32>
      %76 = vector.shape_cast %73 : vector<8x2xf32> to vector<1x8x2xf32>
      tpu.vector_store %arg4[%c0_22, %c0_23, %c0_24], %76 {strides = array<i32>} : memref<1x8x2xf32, #tpu.memory_space<vmem>>, vector<1x8x2xf32>,
    } else {
    }
    return
  }
  func.func @transform_0(%arg0: i32, %arg1: i32) -> (i32, i32, i32) {
    %c0_i32 = arith.constant 0 : i32
    %c0_i32_0 = arith.constant 0 : i32
    %c0_i32_1 = arith.constant 0 : i32
    return %arg0, %c0_i32, %c0_i32_0 : i32, i32, i32
  }
  func.func @transform_1(%arg0: i32, %arg1: i32) -> (i32, i32) {
    %c0_i32 = arith.constant 0 : i32
    %c0_i32_0 = arith.constant 0 : i32
    %c0_i32_1 = arith.constant 0 : i32
    return %c0_i32, %c0_i32_0 : i32, i32
  }
  func.func @transform_2(%arg0: i32, %arg1: i32) -> (i32, i32, i32) {
    %c0_i32 = arith.constant 0 : i32
    %c0_i32_0 = arith.constant 0 : i32
    %c0_i32_1 = arith.constant 0 : i32
    return %arg0, %c0_i32, %c0_i32_0 : i32, i32, i32
  }
}

module attributes {stable_mosaic.version = 11 : i64} {
  func.func @kernel(%arg0: i32, %arg1: i32, %arg2: memref<1x4x512xbf16, #tpu.memory_space<vmem>>, %arg3: memref<8x36xbf16, #tpu.memory_space<vmem>>, %arg4: memref<8x1xf32, #tpu.memory_space<vmem>>, %arg5: memref<8x1xf32, #tpu.memory_space<vmem>>, %arg6: memref<1x8x384xf32, #tpu.memory_space<vmem>>) attributes {dimension_semantics = [#tpu.dimension_semantics<parallel>, #tpu.dimension_semantics<arbitrary>], iteration_bounds = array<i64: 2, 1>, scalar_prefetch = 0 : i64, scratch_operands = 0 : i64, tpu.core_type = #tpu.core_type<tc>, window_params = [{transform_indices = @transform_0, window_bounds = array<i64: 1, 4, 512>}, {pipeline_mode = #tpu.pipeline_mode<synchronous>, transform_indices = @transform_1, window_bounds = array<i64: 8, 36>}, {pipeline_mode = #tpu.pipeline_mode<synchronous>, transform_indices = @transform_2, window_bounds = array<i64: 8, 1>}, {pipeline_mode = #tpu.pipeline_mode<synchronous>, transform_indices = @transform_3, window_bounds = array<i64: 8, 1>}, {transform_indices = @transform_4, window_bounds = array<i64: 1, 8, 384>}]} {
    %c384_i32 = arith.constant 384 : i32
    %0 = arith.muli %arg1, %c384_i32 : i32
    %1 = tpu.assume_multiple %0, 128 : i32
    %c0 = arith.constant 0 : index
    %c0_0 = arith.constant 0 : index
    %2 = arith.index_cast %1 : i32 to index
    %3 = vector.load %arg2[%c0, %c0_0, %2] : memref<1x4x512xbf16, #tpu.memory_space<vmem>>, vector<1x4x512xbf16>
    %4 = vector.shape_cast %3 : vector<1x4x512xbf16> to vector<4x512xbf16>
    %5 = arith.extf %4 : vector<4x512xbf16> to vector<4x512xf32>
    %6 = vector.extract_strided_slice %5 {offsets = [0, 0], sizes = [4, 384], strides = [1, 1]} : vector<4x512xf32> to vector<4x384xf32>
    %c511_i32 = arith.constant 511 : i32
    %7 = tpu.dynamic_rotate %5 by %c511_i32 dim 1 : vector<4x512xf32>, i32 -> vector<4x512xf32>
    %8 = vector.extract_strided_slice %7 {offsets = [0, 0], sizes = [4, 384], strides = [1, 1]} : vector<4x512xf32> to vector<4x384xf32>
    %c510_i32 = arith.constant 510 : i32
    %9 = tpu.dynamic_rotate %5 by %c510_i32 dim 1 : vector<4x512xf32>, i32 -> vector<4x512xf32>
    %10 = vector.extract_strided_slice %9 {offsets = [0, 0], sizes = [4, 384], strides = [1, 1]} : vector<4x512xf32> to vector<4x384xf32>
    %c494_i32 = arith.constant 494 : i32
    %11 = tpu.dynamic_rotate %5 by %c494_i32 dim 1 : vector<4x512xf32>, i32 -> vector<4x512xf32>
    %12 = vector.extract_strided_slice %11 {offsets = [0, 0], sizes = [4, 384], strides = [1, 1]} : vector<4x512xf32> to vector<4x384xf32>
    %c493_i32 = arith.constant 493 : i32
    %13 = tpu.dynamic_rotate %5 by %c493_i32 dim 1 : vector<4x512xf32>, i32 -> vector<4x512xf32>
    %14 = vector.extract_strided_slice %13 {offsets = [0, 0], sizes = [4, 384], strides = [1, 1]} : vector<4x512xf32> to vector<4x384xf32>
    %c492_i32 = arith.constant 492 : i32
    %15 = tpu.dynamic_rotate %5 by %c492_i32 dim 1 : vector<4x512xf32>, i32 -> vector<4x512xf32>
    %16 = vector.extract_strided_slice %15 {offsets = [0, 0], sizes = [4, 384], strides = [1, 1]} : vector<4x512xf32> to vector<4x384xf32>
    %c476_i32 = arith.constant 476 : i32
    %17 = tpu.dynamic_rotate %5 by %c476_i32 dim 1 : vector<4x512xf32>, i32 -> vector<4x512xf32>
    %18 = vector.extract_strided_slice %17 {offsets = [0, 0], sizes = [4, 384], strides = [1, 1]} : vector<4x512xf32> to vector<4x384xf32>
    %c475_i32 = arith.constant 475 : i32
    %19 = tpu.dynamic_rotate %5 by %c475_i32 dim 1 : vector<4x512xf32>, i32 -> vector<4x512xf32>
    %20 = vector.extract_strided_slice %19 {offsets = [0, 0], sizes = [4, 384], strides = [1, 1]} : vector<4x512xf32> to vector<4x384xf32>
    %c474_i32 = arith.constant 474 : i32
    %21 = tpu.dynamic_rotate %5 by %c474_i32 dim 1 : vector<4x512xf32>, i32 -> vector<4x512xf32>
    %22 = vector.extract_strided_slice %21 {offsets = [0, 0], sizes = [4, 384], strides = [1, 1]} : vector<4x512xf32> to vector<4x384xf32>
    %23 = tpu.concatenate %6, %8, %10, %12, %14, %16, %18, %20, %22 in 0 : vector<4x384xf32>, vector<4x384xf32>, vector<4x384xf32>, vector<4x384xf32>, vector<4x384xf32>, vector<4x384xf32>, vector<4x384xf32>, vector<4x384xf32>, vector<4x384xf32> -> vector<36x384xf32>
    %24 = arith.truncf %23 : vector<36x384xf32> to vector<36x384xbf16>
    %c0_1 = arith.constant 0 : index
    %c0_2 = arith.constant 0 : index
    %25 = vector.load %arg3[%c0_1, %c0_2] : memref<8x36xbf16, #tpu.memory_space<vmem>>, vector<8x36xbf16>
    %cst = arith.constant dense<0.000000e+00> : vector<8x384xf32>
    %26 = tpu.matmul %25, %24, %cst {dimension_numbers = #tpu.dot_dimension_numbers<[1], [0], [0], [1], [0, 0, 1, 1], [], []>} : vector<8x36xbf16>, vector<36x384xbf16>, vector<8x384xf32> -> vector<8x384xf32>
    %c0_3 = arith.constant 0 : index
    %c0_4 = arith.constant 0 : index
    %27 = vector.load %arg4[%c0_3, %c0_4] : memref<8x1xf32, #tpu.memory_space<vmem>>, vector<8x1xf32>
    %28 = vector.broadcast %27 : vector<8x1xf32> to vector<8x384xf32>
    %29 = arith.mulf %26, %28 : vector<8x384xf32>
    %c0_5 = arith.constant 0 : index
    %c0_6 = arith.constant 0 : index
    %30 = vector.load %arg5[%c0_5, %c0_6] : memref<8x1xf32, #tpu.memory_space<vmem>>, vector<8x1xf32>
    %31 = vector.broadcast %30 : vector<8x1xf32> to vector<8x384xf32>
    %32 = arith.addf %29, %31 : vector<8x384xf32>
    %cst_7 = arith.constant 5.000000e-01 : f32
    %33 = vector.broadcast %cst_7 : f32 to vector<8x384xf32>
    %34 = arith.mulf %33, %32 : vector<8x384xf32>
    %cst_8 = arith.constant 0.707106769 : f32
    %35 = vector.broadcast %cst_8 : f32 to vector<8x384xf32>
    %36 = arith.mulf %32, %35 : vector<8x384xf32>
    %cst_9 = arith.constant 0.000000e+00 : f32
    %37 = vector.broadcast %cst_9 : f32 to vector<8x384xf32>
    %38 = arith.cmpf olt, %36, %37 : vector<8x384xf32>
    %cst_10 = arith.constant -1.000000e+00 : f32
    %cst_11 = arith.constant 1.000000e+00 : f32
    %39 = vector.broadcast %cst_10 : f32 to vector<8x384xf32>
    %40 = vector.broadcast %cst_11 : f32 to vector<8x384xf32>
    %41 = arith.select %38, %39, %40 : vector<8x384xi1>, vector<8x384xf32>
    %42 = math.absf %36 : vector<8x384xf32>
    %cst_12 = arith.constant 0.327591091 : f32
    %43 = vector.broadcast %cst_12 : f32 to vector<8x384xf32>
    %44 = arith.mulf %43, %42 : vector<8x384xf32>
    %cst_13 = arith.constant 1.000000e+00 : f32
    %45 = vector.broadcast %cst_13 : f32 to vector<8x384xf32>
    %46 = arith.addf %45, %44 : vector<8x384xf32>
    %cst_14 = arith.constant 1.000000e+00 : f32
    %47 = vector.broadcast %cst_14 : f32 to vector<8x384xf32>
    %48 = arith.divf %47, %46 : vector<8x384xf32>
    %cst_15 = arith.constant 1.06140542 : f32
    %49 = vector.broadcast %cst_15 : f32 to vector<8x384xf32>
    %50 = arith.mulf %48, %49 : vector<8x384xf32>
    %cst_16 = arith.constant -1.45315206 : f32
    %51 = vector.broadcast %cst_16 : f32 to vector<8x384xf32>
    %52 = arith.addf %51, %50 : vector<8x384xf32>
    %53 = arith.mulf %48, %52 : vector<8x384xf32>
    %cst_17 = arith.constant 1.42141378 : f32
    %54 = vector.broadcast %cst_17 : f32 to vector<8x384xf32>
    %55 = arith.addf %54, %53 : vector<8x384xf32>
    %56 = arith.mulf %48, %55 : vector<8x384xf32>
    %cst_18 = arith.constant -0.284496725 : f32
    %57 = vector.broadcast %cst_18 : f32 to vector<8x384xf32>
    %58 = arith.addf %57, %56 : vector<8x384xf32>
    %59 = arith.mulf %48, %58 : vector<8x384xf32>
    %cst_19 = arith.constant 0.254829586 : f32
    %60 = vector.broadcast %cst_19 : f32 to vector<8x384xf32>
    %61 = arith.addf %60, %59 : vector<8x384xf32>
    %62 = arith.mulf %48, %61 : vector<8x384xf32>
    %cst_20 = arith.constant 0.000000e+00 : f32
    %63 = vector.broadcast %cst_20 : f32 to vector<8x384xf32>
    %64 = arith.subf %63, %42 : vector<8x384xf32>
    %65 = arith.mulf %64, %42 : vector<8x384xf32>
    %66 = math.exp %65 : vector<8x384xf32>
    %67 = arith.mulf %62, %66 : vector<8x384xf32>
    %cst_21 = arith.constant 1.000000e+00 : f32
    %68 = vector.broadcast %cst_21 : f32 to vector<8x384xf32>
    %69 = arith.subf %68, %67 : vector<8x384xf32>
    %70 = arith.mulf %41, %69 : vector<8x384xf32>
    %cst_22 = arith.constant 1.000000e+00 : f32
    %71 = vector.broadcast %cst_22 : f32 to vector<8x384xf32>
    %72 = arith.addf %71, %70 : vector<8x384xf32>
    %73 = arith.mulf %34, %72 : vector<8x384xf32>
    %c0_23 = arith.constant 0 : index
    %c0_24 = arith.constant 0 : index
    %c0_25 = arith.constant 0 : index
    %74 = vector.load %arg6[%c0_23, %c0_24, %c0_25] : memref<1x8x384xf32, #tpu.memory_space<vmem>>, vector<1x8x384xf32>
    %75 = vector.shape_cast %74 : vector<1x8x384xf32> to vector<8x384xf32>
    %76 = vector.shape_cast %73 : vector<8x384xf32> to vector<1x8x384xf32>
    tpu.vector_store %arg6[%c0_23, %c0_24, %c0_25], %76 {strides = array<i32>} : memref<1x8x384xf32, #tpu.memory_space<vmem>>, vector<1x8x384xf32>,
    return
  }
  func.func @transform_0(%arg0: i32, %arg1: i32) -> (i32, i32, i32) {
    %c0_i32 = arith.constant 0 : i32
    %c0_i32_0 = arith.constant 0 : i32
    %c0_i32_1 = arith.constant 0 : i32
    return %arg0, %c0_i32, %c0_i32_0 : i32, i32, i32
  }
  func.func @transform_1(%arg0: i32, %arg1: i32) -> (i32, i32) {
    %c0_i32 = arith.constant 0 : i32
    %c0_i32_0 = arith.constant 0 : i32
    %c0_i32_1 = arith.constant 0 : i32
    return %c0_i32, %c0_i32_0 : i32, i32
  }
  func.func @transform_2(%arg0: i32, %arg1: i32) -> (i32, i32) {
    %c0_i32 = arith.constant 0 : i32
    %c0_i32_0 = arith.constant 0 : i32
    %c0_i32_1 = arith.constant 0 : i32
    return %c0_i32, %c0_i32_0 : i32, i32
  }
  func.func @transform_3(%arg0: i32, %arg1: i32) -> (i32, i32) {
    %c0_i32 = arith.constant 0 : i32
    %c0_i32_0 = arith.constant 0 : i32
    %c0_i32_1 = arith.constant 0 : i32
    return %c0_i32, %c0_i32_0 : i32, i32
  }
  func.func @transform_4(%arg0: i32, %arg1: i32) -> (i32, i32, i32) {
    %c0_i32 = arith.constant 0 : i32
    %c0_i32_0 = arith.constant 0 : i32
    return %arg0, %c0_i32, %arg1 : i32, i32, i32
  }
}

</mosaic_0001>

<bundles_post_ra>
// kernel: basic_conv.2
= control target key start
LH: loop header
LB: loop body
LE: loop exit
PB: predicated region body
PF: predicated region fallthrough
CT: control target
= control target key end

     0   :  { %s769_s9 = smov 0   ;;  %s771_s10 = smov 0   ;;  %s953_s0 = inlined_call_operand.vmem [shape: bf16[2,4,512], index: 0, kind: input, shape index: {}]   ;;  %s954_s1 = inlined_call_operand.vmem [shape: bf16[8,36], index: 1, kind: input, shape index: {}]   ;;  %s955_s2 = inlined_call_operand.vmem [shape: f32[2,8,2], index: 2, kind: output, shape index: {}]  }
   0x1   :  { %s773_s11 = smov 0  }
   0x2 LB: > { %s24_s12 = sadd.s32 1, %s737_s10  ;;  %p591_p0 = scmp.ge.s32.totalorder %s741_s11, 1  ;;  %s741_s11 = sphi %s773_s11, %s12_s11   ;;  %s737_s10 = sphi %s771_s10, %s957_s10   ;;  %s733_s9 = sphi %s769_s9, %s956_s9  }
   0x3   : > { %p26_p1 = scmp.ge.s32.totalorder %s24_s12, 2  ;;  %p124_p2 = scmp.lt.s32.totalorder %s741_s11, 3 }
   0x5   : > { %s959_s12 = smov (%p26_p1, %s24_s12), 0  ;;  %p125_p3 = pnand %p591_p0, %p124_p2 }
   0x6   : > { %p145_p4 = scmp.lt.s32.totalorder (!%p125_p3), %s733_s9, 1  ;;  %s744_s17 = smov (!%p125_p3), 108  }
   0x7   : > { %128 = sbr.rel (%p125_p3) target bundleno = 538 (0x21a), region = 28  ;;  %s745_s18 = smov (!%p125_p3), 90  }
   0x8   : > { %s746_s19 = smov (!%p125_p3), 91   ;;  %s747_s20 = smov (!%p125_p3), 92  }
   0x9   : > { %s748_s21 = smov (!%p125_p3), 109   ;;  %s749_s22 = smov (!%p125_p3), 110  }
   0xa   : > { %s750_s23 = smov (!%p125_p3), 127   ;;  %s752_s24 = smov (!%p125_p3), 126  }
   0xc   : > { %s961_s9 = smov (!%p145_p4, %s733_s9), 1  ;;  %v743_v5 = vmov 0.0   ;;  %v751_v10 = vmov 0   ;;  %vm753_vm0 = vmmov 0   ;;  %v183_v11 = vlaneseq }
   0xd   : > { %s603_s13 = sshll.u32 %s961_s9, 3  ;;  %608 = vmatprep.subr.bf16.mxu1 %v743_v5  ;;  %378 = vmatprep.mubr.bf16.mxu0 %v751_v10  ;;  %vm336_vm2 = vcmask 1041408   ;;  %vm309_vm7 = vcmask 1043456   ;;  %vm332_vm11 = vcmask 293888   ;;  %vm159_vm12 = vcmask 15360  }
   0xe   : > { %s149_s16 = scalar_lea.vmem %s953_s0, %s603_s13  ;;  %614 = vmatprep.mubr.msk.bf16.mxu1 %vm753_vm0, %v743_v5  ;;  %v817_v12 = vand.u32 127, %v183_v11  ;;  %160 = vst.msk [vmem:[#allocation2] sm:$0xff] %vm159_vm12, %v743_v5  ;;  %s153_s29 = scalar_lea.vmem %s955_s2, %s603_s13 }
   0xf   : > { %v166_v0 = vld [vmem:[%s149_s16] sm:$0xff] }
  0x10   : > { %v795_v1 = vunpack.c.l.bf16 %v166_v0  ;;  %v797_v2 = vunpack.c.h.bf16 %v166_v0  ;;  %vm269_vm1 = vcmp.lt.s32.totalorder %v817_v12, 90  ;;  %vm233_vm3 = vcmp.lt.s32.totalorder %v817_v12, 108 }
  0x11   : > { %vm257_vm4 = vcmp.lt.s32.totalorder %v817_v12, 91  ;;  %vm221_vm5 = vcmp.lt.s32.totalorder %v817_v12, 109  ;;  %vm245_vm6 = vcmp.lt.s32.totalorder %v817_v12, 92  ;;  %vm185_vm8 = vcmp.lt.s32.totalorder %v817_v12, 127 }
  0x12   : > { %v801_v3 = vcombine.high %v795_v1, %v795_v1  ;;  %v172_v4 = vcombine.high %v797_v2, %v797_v2  ;;  %vm209_vm9 = vcmp.lt.s32.totalorder %v817_v12, 110  ;;  %vm197_vm10 = vcmp.lt.s32.totalorder %v817_v12, 126 }
  0x14   : > { %v669_v6 = vpack.i.bf16 %v797_v2, %v801_v3  ;;  %v659_v7 = vpack.i.bf16 %v801_v3, %v795_v1  ;;  %v664_v8 = vpack.i.bf16 %v172_v4, %v797_v2  ;;  %v684_v9 = vpack.i.bf16 %v172_v4, %v795_v1 }
  0x16   : > { %670 = vrot.lane.b32.xlu1 %v669_v6, %s744_s17  ;;  %660 = vrot.lane.b32.xlu0 %v659_v7, %s745_s18 }
  0x1a   : > { %675 = vrot.lane.b32.xlu1 %v669_v6, %s746_s19  ;;  %665 = vrot.lane.b32.xlu0 %v664_v8, %s745_s18 }
  0x1e   : > { %685 = vrot.lane.b32.xlu1 %v684_v9, %s746_s19  ;;  %680 = vrot.lane.b32.xlu0 %v684_v9, %s744_s17 }
  0x22   : > { %695 = vrot.lane.b32.xlu1 %v669_v6, %s747_s20  ;;  %690 = vrot.lane.b32.xlu0 %v669_v6, %s748_s21 }
  0x26   : > { %237 = vrot.lane.b32.xlu1 %v795_v1, %s747_s20  ;;  %700 = vrot.lane.b32.xlu0 %v684_v9, %s748_s21 }
  0x2a   : > { %710 = vrot.lane.b32.xlu1 %v669_v6, %s749_s22  ;;  %705 = vrot.lane.b32.xlu0 %v669_v6, %s750_s23 }
  0x2e   : > { %201 = vrot.lane.b32.xlu1 %v795_v1, %s749_s22  ;;  %175 = vrot.lane.b32.xlu0 %v795_v1, %s750_s23 }
  0x32   : > { %189 = vrot.lane.b32.xlu1 %v795_v1, %s752_s24  ;;  %715 = vrot.lane.b32.xlu0 %v669_v6, %s752_s24 }
  0x36   : > { %181 = vrot.lane.b32.xlu1 %v172_v4, %s750_s23  ;;  %243 = vrot.lane.b32.xlu0 %v172_v4, %s747_s20 }
  0x3a   : > { %195 = vrot.lane.b32.xlu1 %v172_v4, %s752_s24  ;;  %207 = vrot.lane.b32.xlu0 %v172_v4, %s749_s22 }
  0x88   : > { %v819_v13 = vpop.permute.xlu1 %670  ;;  %v661_v14 = vpop.permute.xlu0 %660 }
  0x89   : > { %v663_v15 = vunpack.i.h.bf16 %v661_v14  ;;  %v662_v16 = vunpack.i.l.bf16 %v661_v14  ;;  %v673_v22 = vunpack.i.h.bf16 %v819_v13  ;;  %v672_v23 = vunpack.i.l.bf16 %v819_v13 }
  0x8b   : > { %v272_v17 = vsel %vm269_vm1, %v662_v16, %v663_v15  ;;  %v235_v35 = vsel %vm233_vm3, %v672_v23, %v673_v22 }
  0x8c   : > { %v822_v18 = vpop.permute.xlu1 %675  ;;  %v666_v19 = vpop.permute.xlu0 %665  ;;  %v328_v24 = vpack.c.bf16 %v272_v17, %v272_v17  ;;  %v295_v45 = vrot.slane %v235_v35, 4 }
  0x8d   : > { %v668_v20 = vunpack.i.h.bf16 %v666_v19  ;;  %v667_v21 = vunpack.i.l.bf16 %v666_v19  ;;  %v678_v25 = vunpack.i.h.bf16 %v822_v18  ;;  %v677_v26 = vunpack.i.l.bf16 %v822_v18 }
  0x8e   : > { %v338_v33 = vsel %vm336_vm2, %v328_v24, 0 }
  0x8f   : > { %v271_v27 = vsel %vm269_vm1, %v663_v15, %v667_v21  ;;  %v270_v28 = vsel %vm269_vm1, %v667_v21, %v668_v20  ;;  %v259_v36 = vsel %vm257_vm4, %v677_v26, %v678_v25 }
  0x90   : > { %v686_v29 = vpop.permute.xlu1 %685  ;;  %v830_v30 = vpop.permute.xlu0 %680  ;;  %v329_v31 = vpack.c.bf16 %v271_v27, %v271_v27  ;;  %v330_v32 = vpack.c.bf16 %v270_v28, %v270_v28  ;;  %v304_v46 = vrot.slane %v259_v36, 4 }
  0x91   : > { %v682_v37 = vunpack.i.l.bf16 %v830_v30  ;;  %v687_v38 = vunpack.i.l.bf16 %v686_v29  ;;  %v688_v8 = vunpack.i.h.bf16 %v686_v29  ;;  %v683_v11 = vunpack.i.h.bf16 %v830_v30 }
  0x92   : > { %595 = vmatprep.subr.msk.bf16.mxu0 %vm336_vm2, %v329_v31  ;;  %v344_v34 = vsel %vm336_vm2, %v330_v32, 0 }
  0x93   : > { %357 = vmatpush1.bf16.msra.mxu0 %v338_v33  ;;  %609 = vmatpush3.bf16.msra.mxu1 %v344_v34  ;;  %v236_v47 = vsel %vm233_vm3, %v682_v37, %v672_v23  ;;  %v260_v50 = vsel %vm257_vm4, %v687_v38, %v677_v26  ;;  %v258_v19 = vsel %vm257_vm4, %v678_v25, %v688_v8 }
  0x94   : > { %v841_v39 = vpop.permute.xlu1 %695  ;;  %v691_v40 = vpop.permute.xlu0 %690  ;;  %610 = vmatprep.subr.bf16.mxu1 %v743_v5  ;;  %v294_v57 = vrot.slane %v236_v47, 4  ;;  %v303_v59 = vrot.slane %v260_v50, 4  ;;  %v234_v24 = vsel %vm233_vm3, %v673_v22, %v683_v11  ;;  %v305_v30 = vrot.slane %v258_v19, 4 }
  0x95   : > { %v698_v41 = vunpack.i.h.bf16 %v841_v39  ;;  %v697_v42 = vunpack.i.l.bf16 %v841_v39  ;;  %v693_v43 = vunpack.i.h.bf16 %v691_v40  ;;  %v692_v44 = vunpack.i.l.bf16 %v691_v40 }
  0x96   : > { %v296_v33 = vrot.slane %v234_v24, 4 }
  0x97   : > { %v223_v48 = vsel %vm221_vm5, %v692_v44, %v693_v43  ;;  %v247_v49 = vsel %vm245_vm6, %v697_v42, %v698_v41 }
  0x98   : > { %v238_v51 = vpop.permute.xlu1 %237  ;;  %v701_v52 = vpop.permute.xlu0 %700  ;;  %v317_v53 = vsel %vm309_vm7, %v223_v48, %v295_v45  ;;  %v320_v54 = vsel %vm309_vm7, %v247_v49, %v304_v46 }
  0x99   : > { %v702_v55 = vunpack.i.l.bf16 %v701_v52  ;;  %v326_v56 = vpack.c.bf16 %v320_v54, %v317_v53  ;;  %v248_v58 = vsel %vm245_vm6, %v238_v51, %v697_v42  ;;  %v703_v20 = vunpack.i.h.bf16 %v701_v52  ;;  %v331_v51 = vld [vmem:[%s954_s1] sm:$0xf] }
  0x9a   : > { %v319_v0 = vsel %vm309_vm7, %v248_v58, %v303_v59  ;;  %v922_v58 = vmul.u32.u64.low 3817748708, %v817_v12  ;;  %v923_v59 = vmul.u32.u64.high 3817748708, %v817_v12, %v922_v58 }
  0x9b   : > { %v224_v60 = vsel %vm221_vm5, %v702_v55, %v692_v44  ;;  %358 = vmatprep.subr.bf16.mxu0 %v326_v56  ;;  %v222_v34 = vsel %vm221_vm5, %v693_v43, %v703_v20  ;;  %v427_v56 = vadd.s32 128, %v817_v12 }
  0x9c   : > { %v711_v61 = vpop.permute.xlu1 %710  ;;  %v706_v62 = vpop.permute.xlu0 %705  ;;  %v316_v63 = vsel %vm309_vm7, %v224_v60, %v294_v57  ;;  %v428_v57 = vadd.s32 256, %v817_v12 }
  0x9d   : > { %v708_v4 = vunpack.i.h.bf16 %v706_v62  ;;  %v707_v6 = vunpack.i.l.bf16 %v706_v62  ;;  %v325_v7 = vpack.c.bf16 %v319_v0, %v316_v63  ;;  %v713_v9 = vunpack.i.h.bf16 %v711_v61 }
  0x9e   : > { %v712_v10 = vunpack.i.l.bf16 %v711_v61  ;;  %v925_v60 = vmul.u32.u64.low 3817748708, %v427_v56  ;;  %v926_v61 = vmul.u32.u64.high 3817748708, %v427_v56, %v925_v60  ;;  %v442_v63 = vshrl.u32 %v923_v59, 4 }
  0x9f   : > { %359 = vmatpush1.bf16.msra.mxu0 %v325_v7  ;;  %v187_v16 = vsel %vm185_vm8, %v707_v6, %v708_v4 }
  0xa0   : > { %v202_v14 = vpop.permute.xlu1 %201  ;;  %v176_v15 = vpop.permute.xlu0 %175  ;;  %v211_v21 = vsel %vm209_vm9, %v712_v10, %v713_v9  ;;  %v277_v27 = vrot.slane %v187_v16, 4  ;;  %v453_v0 = vshrl.u32 %v926_v61, 4 }
  0xa1   : > { %v188_v17 = vsel %vm185_vm8, %v176_v15, %v707_v6  ;;  %v212_v23 = vsel %vm209_vm9, %v202_v14, %v712_v10  ;;  %v286_v32 = vrot.slane %v211_v21, 4  ;;  %v443_v6 = vmul.u32 18, %v442_v63 }
  0xa2   : > { %v276_v26 = vrot.slane %v188_v17, 4  ;;  %v285_v31 = vrot.slane %v212_v23, 4  ;;  %v311_v37 = vsel %vm309_vm7, %v801_v3, %v277_v27  ;;  %v318_v3 = vsel %vm309_vm7, %v222_v34, %v296_v33 }
  0xa3   : > { %v454_v7 = vmul.u32 18, %v453_v0 }
  0xa4   : > { %v190_v28 = vpop.permute.xlu1 %189  ;;  %v716_v18 = vpop.permute.xlu0 %715  ;;  %v310_v40 = vsel %vm309_vm7, %v795_v1, %v276_v26 }
  0xa5   : > { %v718_v29 = vunpack.i.h.bf16 %v716_v18  ;;  %v717_v25 = vunpack.i.l.bf16 %v716_v18  ;;  %v455_v10 = vsub.s32 %v427_v56, %v454_v7 }
  0xa7   : > { %v199_v13 = vsel %vm197_vm10, %v717_v25, %v718_v29  ;;  %v200_v22 = vsel %vm197_vm10, %v190_v28, %v717_v25  ;;  %vm470_vm15 = vcmp.ne.s32.totalorder %v455_v10, 0  ;;  %vm473_vm0 = vcmp.lt.s32.totalorder %v455_v10, 0 }
  0xa8   : > { %v182_v35 = vpop.permute.xlu1 %181  ;;  %v244_v36 = vpop.permute.xlu0 %243  ;;  %v314_v38 = vsel %vm309_vm7, %v199_v13, %v286_v32  ;;  %v313_v42 = vsel %vm309_vm7, %v200_v22, %v285_v31  ;;  %v479_v15 = vadd.s32 18, %v455_v10  ;;  %vm476_vm4 = vmand %vm473_vm0, %vm470_vm15 }
  0xa9   : > { %v186_v43 = vsel %vm185_vm8, %v708_v4, %v182_v35  ;;  %v246_v44 = vsel %vm245_vm6, %v698_v41, %v244_v36  ;;  %v323_v45 = vpack.c.bf16 %v314_v38, %v311_v37  ;;  %v322_v46 = vpack.c.bf16 %v313_v42, %v310_v40  ;;  %v499_v40 = vld [vmem:[#allocation2] sm:$0xff] }
  0xaa   : > { %v321_v47 = vsel %vm309_vm7, %v246_v44, %v305_v30  ;;  %v278_v49 = vrot.slane %v186_v43, 4  ;;  %v482_v19 = vsel %vm476_vm4, %v479_v15, %v455_v10  ;;  %vm435_vm8 = vcmp.lt.s32.totalorder %v428_v57, 288 }
  0xab   : > { %360 = vmatprep.subr.bf16.mxu0 %v323_v45  ;;  %v327_v48 = vpack.c.bf16 %v321_v47, %v318_v3 }
  0xac   : > { %v196_v1 = vpop.permute.xlu1 %195  ;;  %v208_v50 = vpop.permute.xlu0 %207  ;;  %361 = vmatpush1.bf16.msra.mxu0 %v322_v46  ;;  %v312_v53 = vsel %vm309_vm7, %v797_v2, %v278_v49  ;;  %v928_v2 = vmul.u32.u64.low 3817748708, %v428_v57  ;;  %v929_v62 = vmul.u32.u64.high 3817748708, %v428_v57, %v928_v2 }
  0xad   : > { %v210_v39 = vsel %vm209_vm9, %v713_v9, %v208_v50  ;;  %611 = vmatpush3.bf16.msra.mxu1 %v327_v48  ;;  %v198_v52 = vsel %vm197_vm10, %v718_v29, %v196_v1  ;;  %v444_v9 = vsub.s32 %v817_v12, %v443_v6 }
  0xae   : > { %v287_v41 = vrot.slane %v210_v39, 4  ;;  %612 = vmatprep.subr.bf16.mxu1 %v743_v5  ;;  %v464_v4 = vshrl.u32 %v929_v62, 4 }
  0xaf   : > { %596 = vmatmul.mubr.msk.bf16.vlgmr.msra.gmra.mxu0 %vm332_vm11, %v331_v51  ;;  %vm469_vm13 = vcmp.ne.s32.totalorder %v444_v9, 0  ;;  %vm472_vm14 = vcmp.lt.s32.totalorder %v444_v9, 0  ;;  %v478_v14 = vadd.s32 18, %v444_v9 }
  0xb0   : > { %v315_v54 = vsel %vm309_vm7, %v198_v52, %v287_v41  ;;  %v465_v8 = vmul.u32 18, %v464_v4  ;;  %vm475_vm1 = vmand %vm472_vm14, %vm469_vm13  ;;  %vm485_vm7 = vcmp.lt.s32.totalorder %v482_v19, 16  ;;  %vm516_vm13 = vcmask 15368  }
  0xb1   : > { %v324_v55 = vpack.c.bf16 %v315_v54, %v312_v53  ;;  %v481_v17 = vsel %vm475_vm1, %v478_v14, %v444_v9  ;;  %v599_v23 = vsel %vm485_vm7, 1.0, %v743_v5 }
  0xb2   : > { %v466_v11 = vsub.s32 %v428_v57, %v465_v8  ;;  %vm484_vm6 = vcmp.lt.s32.totalorder %v481_v17, 16 }
  0xb3   : > { %613 = vmatpush3.bf16.msra.mxu1 %v324_v55  ;;  %v598_v12 = vsel %vm484_vm6, 1.0, %v743_v5 }
  0xb4   : > { %vm471_vm2 = vcmp.ne.s32.totalorder %v466_v11, 0  ;;  %vm474_vm3 = vcmp.lt.s32.totalorder %v466_v11, 0  ;;  %v480_v16 = vadd.s32 18, %v466_v11 }
  0xb5   : > { %vm477_vm5 = vmand %vm474_vm3, %vm471_vm2 }
  0xb6   : > { %615 = vmatmul.mubr.msk.bf16.vlgmr.msra.gmra.mxu1 %vm332_vm11, %v331_v51  ;;  %v483_v20 = vsel %vm477_vm5, %v480_v16, %v466_v11  ;;  %vm505_vm11 = vcmask 7168  }
  0xb7   : > { %vm486_vm9 = vcmp.lt.s32.totalorder %v483_v20, 16 }
  0xb8   : > { %vm489_vm10 = vmand %vm435_vm8, %vm486_vm9 }
  0xb9   : > { %v600_v18 = vsel %vm489_vm10, 1.0, %v743_v5 }
 0x16f   : > { %v380_v21 = vpop.f32.mrf.mxu0 }
 0x170   : > { %v496_v24 = vmul.f32 %v598_v12, %v380_v21 }
 0x171   : > { %v382_v26 = vpop.f32.mrf.mxu0 }
 0x172   : > { %v497_v27 = vmul.f32 %v599_v23, %v382_v26  ;;  %v508_v29 = vmul.f32 %v496_v24, %v380_v21 }
 0x173   : > { %v384_v28 = vpop.f32.mrf.mxu0 }
 0x174   : > { %v509_v25 = vmul.f32 %v497_v27, %v382_v26  ;;  %v500_v33 = vadd.f32 %v497_v27, %v496_v24 }
 0x175   : > { %v385_v30 = vpop.f32.mrf.mxu0 }
 0x176   : > { %v421_v31 = vpop.f32.mrf.mxu1  ;;  %v511_v35 = vadd.f32 %v509_v25, %v508_v29 }
 0x177   : > { %v498_v32 = vmul.f32 %v600_v18, %v421_v31 }
 0x178   : > { %v616_v34 = vpop.f32.mrf.mxu1 }
 0x179   : > { %v510_v13 = vmul.f32 %v498_v32, %v421_v31  ;;  %v501_v22 = vadd.f32 %v500_v33, %v498_v32 }
 0x17a   : > { %v424_v36 = vpop.f32.mrf.mxu1 }
 0x17b   : > { %502 = vadd.xlane.f32.xlu0 %v501_v22  ;;  %v512_v37 = vadd.f32 %v511_v35, %v510_v13 }
 0x17c   : > { %v617_v38 = vpop.f32.mrf.mxu1 }
 0x17d   : > { %513 = vadd.xlane.f32.xlu1 %v512_v37 }
 0x204   : > { %v503_v42 = vpop.xlane.xlu0 %502 }
 0x205   : > { %v504_v5 = vadd.f32 %v503_v42, %v499_v40 }
 0x206   : > { %v514_v43 = vpop.xlane.xlu1 %513 }
 0x207   : > { %506 = vst.msk [vmem:[#allocation2] sm:$0xff] %vm505_vm11, %v504_v5 }
 0x20e   : > { %v507_v44 = vld [vmem:[#allocation2] sm:$0xff] }
 0x20f   : > { %v515_v45 = vadd.f32 %v514_v43, %v507_v44 }
 0x211   : > { %517 = vst.msk [vmem:[#allocation2] sm:$0xff] %vm516_vm13, %v515_v45 }
 0x218   : > { %v521_v46 = vld [vmem:[#allocation2] sm:$0xff] }
 0x219   : > { %523 = vst.msk [vmem:[%s153_s29] sm:$0xff] %vm159_vm12, %v521_v46 }
 0x21a PF: > { %s12_s11 = sadd.s32 1, %s741_s11   ;;  %s956_s9 = smov %s737_s10 }
 0x21b   : > { %p9_p5 = scmp.ge.s32.totalorder %s12_s11, 4   ;;  %s957_s10 = smov %s959_s12 }
 0x21d   :  { %11 = sbr.rel (!%p9_p5) target bundleno = 2 (0x2), region = 67 }

// kernel: basic_conv.3
= control target key start
LH: loop header
LB: loop body
LE: loop exit
PB: predicated region body
PF: predicated region fallthrough
CT: control target
= control target key end

     0   :  { %s883_s15 = smov 0   ;;  %s885_s16 = smov 0   ;;  %s1045_s0 = inlined_call_operand.vmem [shape: bf16[2,4,512], index: 0, kind: input, shape index: {}]   ;;  %s1046_s1 = inlined_call_operand.vmem [shape: bf16[8,36], index: 1, kind: input, shape index: {}]   ;;  %s1047_s2 = inlined_call_operand.vmem [shape: f32[8,1], index: 2, kind: input, shape index: {}]   ;;  %s1048_s3 = inlined_call_operand.vmem [shape: f32[8,1], index: 3, kind: input, shape index: {}]   ;;  %s1049_s4 = inlined_call_operand.vmem [shape: f32[2,8,384], index: 4, kind: output, shape index: {}]  }
   0x1   :  { %s887_s17 = smov 0  }
   0x2 LB: > { %s26_s18 = sadd.s32 1, %s840_s16  ;;  %p677_p0 = scmp.ge.s32.totalorder %s844_s17, 1  ;;  %s844_s17 = sphi %s887_s17, %s14_s17   ;;  %s840_s16 = sphi %s885_s16, %s1051_s16   ;;  %s836_s15 = sphi %s883_s15, %s1050_s15  }
   0x3   : > { %p28_p1 = scmp.ge.s32.totalorder %s26_s18, 2  ;;  %p176_p2 = scmp.lt.s32.totalorder %s844_s17, 3 }
   0x5   : > { %s1053_s18 = smov (%p28_p1, %s26_s18), 0  ;;  %p177_p3 = pnand %p677_p0, %p176_p2 }
   0x6   : > { %p206_p4 = scmp.lt.s32.totalorder (!%p177_p3), %s836_s15, 1  ;;  %s847_s23 = smov (!%p177_p3), 108  }
   0x7   : > { %180 = sbr.rel (%p177_p3) target bundleno = 426 (0x1aa), region = 36  ;;  %s848_s24 = smov (!%p177_p3), 90  }
   0x8   : > { %s849_s25 = smov (!%p177_p3), 91   ;;  %s850_s26 = smov (!%p177_p3), 92  }
   0x9   : > { %s851_s27 = smov (!%p177_p3), 109   ;;  %s852_s28 = smov (!%p177_p3), 110  }
   0xa   : > { %s853_s29 = smov (!%p177_p3), 127   ;;  %s856_s30 = smov (!%p177_p3), 126  }
   0xc   : > { %s1055_s15 = smov (!%p206_p4, %s836_s15), 1  ;;  %v846_v5 = vmov 0.0   ;;  %v854_v10 = vmov 0   ;;  %vm855_vm0 = vmmov 0   ;;  %v488_v11 = vld [vmem:[%s1047_s2] sm:$0xff]  ;;  %v244_v13 = vlaneseq }
   0xd   : > { %s686_s19 = sshll.u32 %s1055_s15, 3  ;;  %691 = vmatprep.subr.bf16.mxu1 %v846_v5  ;;  %439 = vmatprep.mubr.bf16.mxu0 %v854_v10  ;;  %v497_v12 = vld [vmem:[%s1048_s3] sm:$0xff]  ;;  %vm397_vm2 = vcmask 1041408   ;;  %vm370_vm7 = vcmask 1043456   ;;  %vm393_vm11 = vcmask 293888   ;;  %s701_s11 = smul.u32 24, %s1055_s15 }
   0xe   : > { %s210_s22 = scalar_lea.vmem %s1045_s0, %s686_s19  ;;  %808 = vset.pattern.permute.xlu0 %v854_v10  ;;  %809 = vset.pattern.permute.xlu1 %v854_v10  ;;  %v933_v14 = vand.u32 127, %v244_v13 }
   0xf   : > { %v227_v0 = vld [vmem:[%s210_s22] sm:$0xff]  ;;  %697 = vmatprep.mubr.msk.bf16.mxu1 %vm855_vm0, %v846_v5  ;;  %s219_s14 = scalar_lea.vmem %s1049_s4, %s701_s11 }
  0x10   : > { %v907_v1 = vunpack.c.l.bf16 %v227_v0  ;;  %v909_v2 = vunpack.c.h.bf16 %v227_v0  ;;  %vm330_vm1 = vcmp.lt.s32.totalorder %v933_v14, 90  ;;  %vm294_vm3 = vcmp.lt.s32.totalorder %v933_v14, 108 }
  0x11   : > { %vm318_vm4 = vcmp.lt.s32.totalorder %v933_v14, 91  ;;  %vm306_vm5 = vcmp.lt.s32.totalorder %v933_v14, 92  ;;  %vm282_vm6 = vcmp.lt.s32.totalorder %v933_v14, 109  ;;  %vm246_vm8 = vcmp.lt.s32.totalorder %v933_v14, 127 }
  0x12   : > { %v913_v3 = vcombine.high %v907_v1, %v907_v1  ;;  %v233_v4 = vcombine.high %v909_v2, %v909_v2  ;;  %vm270_vm9 = vcmp.lt.s32.totalorder %v933_v14, 110  ;;  %vm258_vm10 = vcmp.lt.s32.totalorder %v933_v14, 126 }
  0x14   : > { %v748_v6 = vpack.i.bf16 %v909_v2, %v913_v3  ;;  %v738_v7 = vpack.i.bf16 %v913_v3, %v907_v1  ;;  %v743_v8 = vpack.i.bf16 %v233_v4, %v909_v2  ;;  %v763_v9 = vpack.i.bf16 %v233_v4, %v907_v1 }
  0x16   : > { %749 = vrot.lane.b32.xlu1 %v748_v6, %s847_s23  ;;  %739 = vrot.lane.b32.xlu0 %v738_v7, %s848_s24 }
  0x1a   : > { %754 = vrot.lane.b32.xlu1 %v748_v6, %s849_s25  ;;  %744 = vrot.lane.b32.xlu0 %v743_v8, %s848_s24 }
  0x1e   : > { %764 = vrot.lane.b32.xlu1 %v763_v9, %s849_s25  ;;  %759 = vrot.lane.b32.xlu0 %v763_v9, %s847_s23 }
  0x22   : > { %774 = vrot.lane.b32.xlu1 %v748_v6, %s850_s26  ;;  %769 = vrot.lane.b32.xlu0 %v748_v6, %s851_s27 }
  0x26   : > { %784 = vrot.lane.b32.xlu1 %v763_v9, %s850_s26  ;;  %779 = vrot.lane.b32.xlu0 %v763_v9, %s851_s27 }
  0x2a   : > { %794 = vrot.lane.b32.xlu1 %v748_v6, %s852_s28  ;;  %789 = vrot.lane.b32.xlu0 %v748_v6, %s853_s29 }
  0x2e   : > { %262 = vrot.lane.b32.xlu1 %v907_v1, %s852_s28  ;;  %799 = vrot.lane.b32.xlu0 %v763_v9, %s853_s29 }
  0x32   : > { %250 = vrot.lane.b32.xlu1 %v907_v1, %s856_s30  ;;  %804 = vrot.lane.b32.xlu0 %v748_v6, %s856_s30 }
  0x36   : > { %256 = vrot.lane.b32.xlu1 %v233_v4, %s856_s30  ;;  %268 = vrot.lane.b32.xlu0 %v233_v4, %s852_s28 }
  0x3a   : > { %491 = vperm.xlu0 %808, %v488_v11   ;;  %500 = vperm.xlu1 %809, %v497_v12  }
  0x88   : > { %v750_v15 = vpop.permute.xlu1 %749  ;;  %v740_v16 = vpop.permute.xlu0 %739 }
  0x89   : > { %v742_v17 = vunpack.i.h.bf16 %v740_v16  ;;  %v741_v18 = vunpack.i.l.bf16 %v740_v16  ;;  %v752_v24 = vunpack.i.h.bf16 %v750_v15  ;;  %v751_v25 = vunpack.i.l.bf16 %v750_v15 }
  0x8b   : > { %v333_v19 = vsel %vm330_vm1, %v741_v18, %v742_v17  ;;  %v296_v39 = vsel %vm294_vm3, %v751_v25, %v752_v24 }
  0x8c   : > { %v755_v20 = vpop.permute.xlu1 %754  ;;  %v745_v21 = vpop.permute.xlu0 %744  ;;  %v389_v26 = vpack.c.bf16 %v333_v19, %v333_v19  ;;  %v356_v50 = vrot.slane %v296_v39, 4 }
  0x8d   : > { %v747_v22 = vunpack.i.h.bf16 %v745_v21  ;;  %v746_v23 = vunpack.i.l.bf16 %v745_v21  ;;  %v757_v27 = vunpack.i.h.bf16 %v755_v20  ;;  %v756_v28 = vunpack.i.l.bf16 %v755_v20 }
  0x8e   : > { %v399_v37 = vsel %vm397_vm2, %v389_v26, 0 }
  0x8f   : > { %v332_v29 = vsel %vm330_vm1, %v742_v17, %v746_v23  ;;  %v331_v30 = vsel %vm330_vm1, %v746_v23, %v747_v22  ;;  %v320_v40 = vsel %vm318_vm4, %v756_v28, %v757_v27 }
  0x90   : > { %v765_v31 = vpop.permute.xlu1 %764  ;;  %v760_v32 = vpop.permute.xlu0 %759  ;;  %v390_v33 = vpack.c.bf16 %v332_v29, %v332_v29  ;;  %v391_v34 = vpack.c.bf16 %v331_v30, %v331_v30  ;;  %v365_v51 = vrot.slane %v320_v40, 4 }
  0x91   : > { %v766_v35 = vunpack.i.l.bf16 %v765_v31  ;;  %v767_v36 = vunpack.i.h.bf16 %v765_v31  ;;  %v762_v41 = vunpack.i.h.bf16 %v760_v32  ;;  %v761_v42 = vunpack.i.l.bf16 %v760_v32 }
  0x92   : > { %681 = vmatprep.subr.msk.bf16.mxu0 %vm397_vm2, %v390_v33  ;;  %v405_v38 = vsel %vm397_vm2, %v391_v34, 0 }
  0x93   : > { %418 = vmatpush1.bf16.msra.mxu0 %v399_v37  ;;  %v321_v43 = vsel %vm318_vm4, %v766_v35, %v756_v28  ;;  %692 = vmatpush3.bf16.msra.mxu1 %v405_v38  ;;  %v319_v52 = vsel %vm318_vm4, %v757_v27, %v767_v36  ;;  %v295_v53 = vsel %vm294_vm3, %v752_v24, %v762_v41 }
  0x94   : > { %v775_v44 = vpop.permute.xlu1 %774  ;;  %v770_v45 = vpop.permute.xlu0 %769  ;;  %693 = vmatprep.subr.bf16.mxu1 %v846_v5  ;;  %v297_v54 = vsel %vm294_vm3, %v761_v42, %v751_v25  ;;  %v364_v57 = vrot.slane %v321_v43, 4  ;;  %v366_v6 = vrot.slane %v319_v52, 4  ;;  %v357_v7 = vrot.slane %v295_v53, 4 }
  0x95   : > { %v777_v46 = vunpack.i.h.bf16 %v775_v44  ;;  %v776_v47 = vunpack.i.l.bf16 %v775_v44  ;;  %v772_v48 = vunpack.i.h.bf16 %v770_v45  ;;  %v771_v49 = vunpack.i.l.bf16 %v770_v45 }
  0x96   : > { %v355_v8 = vrot.slane %v297_v54, 4 }
  0x97   : > { %v308_v55 = vsel %vm306_vm5, %v776_v47, %v777_v46  ;;  %v284_v56 = vsel %vm282_vm6, %v771_v49, %v772_v48 }
  0x98   : > { %v785_v58 = vpop.permute.xlu1 %784  ;;  %v780_v59 = vpop.permute.xlu0 %779  ;;  %v378_v60 = vsel %vm370_vm7, %v284_v56, %v356_v50  ;;  %v381_v61 = vsel %vm370_vm7, %v308_v55, %v365_v51 }
  0x99   : > { %v787_v62 = vunpack.i.h.bf16 %v785_v58  ;;  %v786_v63 = vunpack.i.l.bf16 %v785_v58  ;;  %v782_v0 = vunpack.i.h.bf16 %v780_v59  ;;  %v781_v4 = vunpack.i.l.bf16 %v780_v59 }
  0x9a   : > { %v387_v9 = vpack.c.bf16 %v381_v61, %v378_v60 }
  0x9b   : > { %v307_v10 = vsel %vm306_vm5, %v777_v46, %v787_v62  ;;  %v309_v11 = vsel %vm306_vm5, %v786_v63, %v776_v47  ;;  %v283_v12 = vsel %vm282_vm6, %v772_v48, %v782_v0  ;;  %v285_v13 = vsel %vm282_vm6, %v781_v4, %v771_v49 }
  0x9c   : > { %419 = vmatprep.subr.bf16.mxu0 %v387_v9  ;;  %v795_v15 = vpop.permute.xlu1 %794  ;;  %v790_v16 = vpop.permute.xlu0 %789  ;;  %v377_v17 = vsel %vm370_vm7, %v285_v13, %v355_v8  ;;  %v380_v18 = vsel %vm370_vm7, %v309_v11, %v364_v57  ;;  %v379_v19 = vsel %vm370_vm7, %v283_v12, %v357_v7  ;;  %v382_v20 = vsel %vm370_vm7, %v307_v10, %v366_v6 }
  0x9d   : > { %v792_v21 = vunpack.i.h.bf16 %v790_v16  ;;  %v791_v22 = vunpack.i.l.bf16 %v790_v16  ;;  %v386_v23 = vpack.c.bf16 %v380_v18, %v377_v17  ;;  %v388_v24 = vpack.c.bf16 %v382_v20, %v379_v19 }
  0x9e   : > { %v797_v25 = vunpack.i.h.bf16 %v795_v15  ;;  %v796_v26 = vunpack.i.l.bf16 %v795_v15 }
  0x9f   : > { %v248_v27 = vsel %vm246_vm8, %v791_v22, %v792_v21  ;;  %420 = vmatpush1.bf16.msra.mxu0 %v386_v23  ;;  %694 = vmatpush3.bf16.msra.mxu1 %v388_v24 }
  0xa0   : > { %v263_v28 = vpop.permute.xlu1 %262  ;;  %v800_v29 = vpop.permute.xlu0 %799  ;;  %695 = vmatprep.subr.bf16.mxu1 %v846_v5  ;;  %v338_v32 = vrot.slane %v248_v27, 4  ;;  %v272_v33 = vsel %vm270_vm9, %v796_v26, %v797_v25 }
  0xa1   : > { %v802_v30 = vunpack.i.h.bf16 %v800_v29  ;;  %v801_v31 = vunpack.i.l.bf16 %v800_v29  ;;  %v273_v34 = vsel %vm270_vm9, %v263_v28, %v796_v26  ;;  %v347_v42 = vrot.slane %v272_v33, 4 }
  0xa2   : > { %v346_v41 = vrot.slane %v273_v34, 4  ;;  %v372_v45 = vsel %vm370_vm7, %v913_v3, %v338_v32  ;;  %v392_v3 = vld [vmem:[%s1046_s1] sm:$0xf] }
  0xa3   : > { %v249_v35 = vsel %vm246_vm8, %v801_v31, %v791_v22  ;;  %v247_v39 = vsel %vm246_vm8, %v792_v21, %v802_v30 }
  0xa4   : > { %v337_v36 = vrot.slane %v249_v35, 4  ;;  %v251_v37 = vpop.permute.xlu1 %250  ;;  %v805_v38 = vpop.permute.xlu0 %804  ;;  %v339_v46 = vrot.slane %v247_v39, 4 }
  0xa5   : > { %v807_v40 = vunpack.i.h.bf16 %v805_v38  ;;  %v806_v5 = vunpack.i.l.bf16 %v805_v38 }
  0xa6   : > { %v371_v50 = vsel %vm370_vm7, %v907_v1, %v337_v36  ;;  %v373_v1 = vsel %vm370_vm7, %v909_v2, %v339_v46 }
  0xa7   : > { %v260_v43 = vsel %vm258_vm10, %v806_v5, %v807_v40  ;;  %v261_v44 = vsel %vm258_vm10, %v251_v37, %v806_v5 }
  0xa8   : > { %v257_v47 = vpop.permute.xlu1 %256  ;;  %v269_v48 = vpop.permute.xlu0 %268  ;;  %v375_v49 = vsel %vm370_vm7, %v260_v43, %v347_v42  ;;  %v374_v51 = vsel %vm370_vm7, %v261_v44, %v346_v41 }
  0xa9   : > { %v271_v52 = vsel %vm270_vm9, %v797_v25, %v269_v48  ;;  %v384_v53 = vpack.c.bf16 %v375_v49, %v372_v45  ;;  %v383_v54 = vpack.c.bf16 %v374_v51, %v371_v50  ;;  %v259_v56 = vsel %vm258_vm10, %v807_v40, %v257_v47 }
  0xaa   : > { %v348_v55 = vrot.slane %v271_v52, 4 }
  0xab   : > { %421 = vmatprep.subr.bf16.mxu0 %v384_v53 }
  0xac   : > { %422 = vmatpush1.bf16.msra.mxu0 %v383_v54  ;;  %v376_v57 = vsel %vm370_vm7, %v259_v56, %v348_v55 }
  0xad   : > { %v385_v58 = vpack.c.bf16 %v376_v57, %v373_v1 }
  0xaf   : > { %682 = vmatmul.mubr.msk.bf16.vlgmr.msra.gmra.mxu0 %vm393_vm11, %v392_v3  ;;  %696 = vmatpush3.bf16.msra.mxu1 %v385_v58 }
  0xb2   : > { %698 = vmatmul.mubr.msk.bf16.vlgmr.msra.gmra.mxu1 %vm393_vm11, %v392_v3 }
  0xb5   : > { %v492_v59 = vpop.permute.xlu0 %491  ;;  %v501_v14 = vpop.permute.xlu1 %500 }
 0x16f   : > { %v441_v60 = vpop.f32.mrf.mxu0 }
 0x170   : > { %v494_v61 = vmul.f32 %v492_v59, %v441_v60 }
 0x171   : > { %v443_v62 = vpop.f32.mrf.mxu0 }
 0x172   : > { %v1008_v63 = vadd.f32 %v501_v14, %v494_v61  ;;  %v495_v0 = vmul.f32 %v492_v59, %v443_v62  ;;  %v482_v4 = vpop.f32.mrf.mxu1 }
 0x173   : > { %v496_v6 = vmul.f32 %v492_v59, %v482_v4  ;;  %v445_v7 = vpop.f32.mrf.mxu0  ;;  %v857_v4 = vmov 1.0  }
 0x174   : > { %v1011_v8 = vmul.f32 0.70710677, %v1008_v63  ;;  %v1013_v2 = vadd.f32 %v501_v14, %v495_v0  ;;  %v699_v9 = vpop.f32.mrf.mxu1 }
 0x175   : > { %v1015_v10 = vadd.f32 %v501_v14, %v496_v6  ;;  %v446_v11 = vpop.f32.mrf.mxu0 }
 0x176   : > { %v518_v12 = vand.u32 2147483647, %v1011_v8  ;;  %v1019_v13 = vmul.f32 0.70710677, %v1013_v2  ;;  %v485_v15 = vpop.f32.mrf.mxu1  ;;  %vm512_vm12 = vcmp.lt.f32.partialorder %v1011_v8, 0.0  ;;  %v506_v8 = vmul.f32 0.5, %v1008_v63 }
 0x177   : > { %v1022_v16 = vmul.f32 0.70710677, %v1015_v10  ;;  %v515_v6 = vsel %vm512_vm12, -1.0, %v857_v4 }
 0x178   : > { %v521_v17 = vmul.f32 0.3275911, %v518_v12  ;;  %v519_v18 = vand.u32 2147483647, %v1019_v13  ;;  %v700_v19 = vpop.f32.mrf.mxu1  ;;  %v560_v26 = vsub.f32 0.0, %v518_v12  ;;  %vm513_vm13 = vcmp.lt.f32.partialorder %v1019_v13, 0.0 }
 0x179   : > { %v520_v20 = vand.u32 2147483647, %v1022_v16  ;;  %vm514_vm14 = vcmp.lt.f32.partialorder %v1022_v16, 0.0  ;;  %v516_v19 = vsel %vm513_vm13, -1.0, %v857_v4  ;;  %v508_v16 = vmul.f32 0.5, %v1015_v10 }
 0x17a   : > { %v524_v21 = vadd.f32 1.0, %v521_v17  ;;  %v522_v22 = vmul.f32 0.3275911, %v519_v18  ;;  %v561_v27 = vsub.f32 0.0, %v519_v18  ;;  %v563_v28 = vmul.f32 %v560_v26, %v518_v12 }
 0x17b   : > { %v523_v23 = vmul.f32 0.3275911, %v520_v20  ;;  %v562_v29 = vsub.f32 0.0, %v520_v20  ;;  %v517_v13 = vsel %vm514_vm14, -1.0, %v857_v4 }
 0x17c   : > { %810 = vrcp.f32 %v524_v21  ;;  %v525_v24 = vadd.f32 1.0, %v522_v22  ;;  %v564_v31 = vmul.f32 %v561_v27, %v519_v18  ;;  %v566_v33 = vmul.f32 1.442695, %v563_v28 }
 0x17d   : > { %v526_v25 = vadd.f32 1.0, %v523_v23  ;;  %v565_v34 = vmul.f32 %v562_v29, %v520_v20  ;;  %v507_v23 = vmul.f32 0.5, %v1013_v2 }
 0x17e   : > { %812 = vrcp.f32 %v525_v24  ;;  %v568_v38 = vmul.f32 1.442695, %v564_v31 }
 0x17f   : > { %814 = vrcp.f32 %v526_v25  ;;  %v570_v42 = vmul.f32 1.442695, %v565_v34 }
 0x180   : > { %816 = vpow2.f32 %v566_v33 }
 0x181   : > { %818 = vpow2.f32 %v568_v38 }
 0x182   : > { %820 = vpow2.f32 %v570_v42 }
 0x189   : > { %v811_v30 = vpop.eup %810 }
 0x18a   : > { %v533_v32 = vmul.f32 1.0614054, %v811_v30 }
 0x18b   : > { %v813_v35 = vpop.eup %812 }
 0x18c   : > { %v536_v36 = vadd.f32 -1.4531521, %v533_v32  ;;  %v534_v37 = vmul.f32 1.0614054, %v813_v35  ;;  %v815_v39 = vpop.eup %814 }
 0x18d   : > { %v535_v41 = vmul.f32 1.0614054, %v815_v39  ;;  %v817_v57 = vpop.eup %816 }
 0x18e   : > { %v539_v40 = vmul.f32 %v811_v30, %v536_v36  ;;  %v537_v5 = vadd.f32 -1.4531521, %v534_v37  ;;  %v819_v62 = vpop.eup %818 }
 0x18f   : > { %v538_v45 = vadd.f32 -1.4531521, %v535_v41  ;;  %v821_v11 = vpop.eup %820 }
 0x190   : > { %v542_v43 = vadd.f32 1.4214138, %v539_v40  ;;  %v540_v44 = vmul.f32 %v813_v35, %v537_v5 }
 0x191   : > { %v541_v48 = vmul.f32 %v815_v39, %v538_v45 }
 0x192   : > { %v545_v46 = vmul.f32 %v811_v30, %v542_v43  ;;  %v543_v47 = vadd.f32 1.4214138, %v540_v44 }
 0x193   : > { %v544_v51 = vadd.f32 1.4214138, %v541_v48 }
 0x194   : > { %v548_v49 = vadd.f32 -0.28449672, %v545_v46  ;;  %v546_v50 = vmul.f32 %v813_v35, %v543_v47 }
 0x195   : > { %v547_v54 = vmul.f32 %v815_v39, %v544_v51 }
 0x196   : > { %v551_v52 = vmul.f32 %v811_v30, %v548_v49  ;;  %v549_v53 = vadd.f32 -0.28449672, %v546_v50 }
 0x197   : > { %v550_v3 = vadd.f32 -0.28449672, %v547_v54 }
 0x198   : > { %v554_v55 = vadd.f32 0.2548296, %v551_v52  ;;  %v552_v56 = vmul.f32 %v813_v35, %v549_v53 }
 0x199   : > { %v553_v59 = vmul.f32 %v815_v39, %v550_v3 }
 0x19a   : > { %v557_v1 = vmul.f32 %v811_v30, %v554_v55  ;;  %v555_v58 = vadd.f32 0.2548296, %v552_v56 }
 0x19b   : > { %v556_v61 = vadd.f32 0.2548296, %v553_v59 }
 0x19c   : > { %v572_v60 = vmul.f32 %v817_v57, %v557_v1  ;;  %v558_v14 = vmul.f32 %v813_v35, %v555_v58 }
 0x19d   : > { %v559_v9 = vmul.f32 %v815_v39, %v556_v61 }
 0x19e   : > { %v575_v0 = vsub.f32 1.0, %v572_v60  ;;  %v573_v7 = vmul.f32 %v819_v62, %v558_v14 }
 0x19f   : > { %v574_v17 = vmul.f32 %v821_v11, %v559_v9 }
 0x1a0   : > { %v578_v12 = vmul.f32 %v575_v0, %v515_v6  ;;  %v576_v15 = vsub.f32 1.0, %v573_v7 }
 0x1a1   : > { %v577_v21 = vsub.f32 1.0, %v574_v17 }
 0x1a2   : > { %v581_v18 = vadd.f32 1.0, %v578_v12  ;;  %v579_v20 = vmul.f32 %v576_v15, %v516_v19 }
 0x1a3   : > { %v580_v25 = vmul.f32 %v577_v21, %v517_v13 }
 0x1a4   : > { %v584_v22 = vmul.f32 %v581_v18, %v506_v8  ;;  %v582_v24 = vadd.f32 1.0, %v579_v20 }
 0x1a5   : > { %v583_v27 = vadd.f32 1.0, %v580_v25 }
 0x1a6   : > { %587 = vst [vmem:[%s219_s14] sm:$0xff] %v584_v22  ;;  %v585_v26 = vmul.f32 %v582_v24, %v507_v23 }
 0x1a7   : > { %v586_v63 = vmul.f32 %v583_v27, %v508_v16 }
 0x1a8   : > { %588 = vst [vmem:[%s219_s14 + $0x8] sm:$0xff] %v585_v26 }
 0x1a9   : > { %589 = vst [vmem:[%s219_s14 + $0x10] sm:$0xff] %v586_v63 }
 0x1aa PF: > { %s14_s17 = sadd.s32 1, %s844_s17   ;;  %s1050_s15 = smov %s840_s16 }
 0x1ab   : > { %p11_p5 = scmp.ge.s32.totalorder %s14_s17, 4   ;;  %s1051_s16 = smov %s1053_s18 }
 0x1ad   :  { %13 = sbr.rel (!%p11_p5) target bundleno = 2 (0x2), region = 67 }

</bundles_post_ra>
